<compile_context>
chip_gen: v5e
topology: v5e:2x2
jax: 0.10.0
libtpu: 0.0.40
codegen_flags: <defaults>
</compile_context>

<pallas_src>
import numpy as np
import jax
import jax.numpy as jnp
from jax.experimental import pallas as pl
from jax.experimental.pallas import tpu as pltpu

_LOG_2PI = float(np.log(2.0 * np.pi))
_LANES = 128
_SUBLANES = 8


def _round_up(x, m):
    return ((x + m - 1) // m) * m


def _cdiv(a, b):
    return -(-a // b)


def _min_row_tile(dtype):
    # second-to-last block dim requirement per element width
    return {4: 8, 2: 16, 1: 32}.get(jnp.dtype(dtype).itemsize, 8)


def _nll_partial_kernel(x_ref, t_ref, s_ref, log_ref, sq_ref):
    """Accumulate sum(log(sigma)) and sum((t - x)^2 / sigma^2) for one tile.

    log_ref / sq_ref are (8, 128) f32 vreg-shaped accumulators, resident
    across the inner ("arbitrary") grid axis; the final cross-lane reduce is
    done once in the JAX glue.
    """
    j = pl.program_id(1)

    @pl.when(j == 0)
    def _():
        log_ref[...] = jnp.zeros_like(log_ref)
        sq_ref[...] = jnp.zeros_like(sq_ref)

    x = x_ref[...].astype(jnp.float32)
    t = t_ref[...].astype(jnp.float32)
    s = s_ref[...].astype(jnp.float32)

    diff = t - x
    inv = pl.reciprocal(s * s, approx=False)
    sq = diff * diff * inv
    logs = jnp.log(s)

    tm = x.shape[0]
    # (tm, 128) -> (tm//8, 8, 128); summing the leading axis is pure vreg
    # adds (no cross-lane XLU work per step).
    sq_ref[...] += sq.reshape(tm // _SUBLANES, _SUBLANES, _LANES).sum(axis=0)
    log_ref[...] += logs.reshape(tm // _SUBLANES, _SUBLANES, _LANES).sum(axis=0)


def _partial_sums(x, t, s, *, tm_target=2048, num_splits=2):
    """Returns (sum(log(sigma)), sum((t-x)^2/sigma^2), total_elem_count)."""
    assert x.shape == t.shape == s.shape
    total = int(np.prod(x.shape)) if x.ndim > 0 else 1

    rows = max(1, _cdiv(total, _LANES))
    min_tm = max(_min_row_tile(x.dtype), _min_row_tile(t.dtype),
                 _min_row_tile(s.dtype))

    # For tiny problems a split axis only adds padding + a grid step.
    if rows < 2 * num_splits * min_tm:
        num_splits = 1

    # Tile: as large as tm_target but no bigger than the (per-split) problem.
    tm = max(min_tm, min(_round_up(tm_target, min_tm),
                         _round_up(_cdiv(rows, num_splits), min_tm)))
    steps = _cdiv(rows, num_splits * tm)
    rows_padded = steps * num_splits * tm
    pad = rows_padded * _LANES - total

    xf = x.reshape(-1)
    tf = t.reshape(-1)
    sf = s.reshape(-1)
    if pad:
        # Padding contributes exactly zero: diff = 0, log(1) = 0.
        xf = jnp.pad(xf, (0, pad))
        tf = jnp.pad(tf, (0, pad))
        sf = jnp.pad(sf, (0, pad), constant_values=1)

    x2 = xf.reshape(rows_padded, _LANES)
    t2 = tf.reshape(rows_padded, _LANES)
    s2 = sf.reshape(rows_padded, _LANES)

    def row_map(c, j):
        return (c * steps + j, 0)

    in_spec = pl.BlockSpec((tm, _LANES), row_map)
    acc_spec = pl.BlockSpec((None, _SUBLANES, _LANES), lambda c, j: (c, 0, 0))

    log_part, sq_part = pl.pallas_call(
        _nll_partial_kernel,
        out_shape=(
            jax.ShapeDtypeStruct((num_splits, _SUBLANES, _LANES), jnp.float32),
            jax.ShapeDtypeStruct((num_splits, _SUBLANES, _LANES), jnp.float32),
        ),
        grid_spec=pltpu.PrefetchScalarGridSpec(
            num_scalar_prefetch=0,
            grid=(num_splits, steps),
            in_specs=[in_spec, in_spec, in_spec],
            out_specs=(acc_spec, acc_spec),
        ),
        compiler_params=pltpu.CompilerParams(
            dimension_semantics=("parallel", "arbitrary")),
    )(x2, t2, s2)

    return jnp.sum(log_part), jnp.sum(sq_part), total


def log_gaussian_nll_sum(x, t, s, no_dim, *, tm_target=2048, num_splits=2):
    """sum over all elements of -(log_coeff + exponent), via Pallas."""
    sum_log, sum_sq, total = _partial_sums(
        x, t, s, tm_target=tm_target, num_splits=num_splits)
    no_dim = jnp.asarray(no_dim, dtype=jnp.float32)
    # nll = no_dim*log(s) + 0.5*no_dim*log(2*pi) + 0.5*diff^2/s^2   (summed)
    return no_dim * sum_log + 0.5 * sum_sq + 0.5 * no_dim * _LOG_2PI * total


class ELBORegressionHetero:
    """JAX/Pallas equivalent of ELBO_regression_hetero (no learnable params)."""

    def __init__(self, train_size):
        self.train_size = train_size

    def __call__(self, input, target, sigma, no_dim, kl, kl_weight=1.0):
        nll = log_gaussian_nll_sum(input, target, sigma, no_dim)
        return nll * self.train_size + kl_weight * kl


def _reference(input, target, sigma, no_dim, kl, train_size, kl_weight=1.0):
    exponent = -0.5 * (target - input) ** 2 / sigma ** 2
    log_coeff = -no_dim * jnp.log(sigma) - 0.5 * no_dim * _LOG_2PI
    nll = -(log_coeff + exponent)
    return jnp.sum(nll) * train_size + kl_weight * kl


if __name__ == "__main__":
    key = jax.random.PRNGKey(0)
    k1, k2, k3, k4 = jax.random.split(key, 4)

    # Small shapes: batch of 16 samples, output dim 32.
    B, D = 16, 32
    x = jax.random.normal(k1, (B, D), dtype=jnp.float32)          # model output
    t = jax.random.normal(k2, (B, D), dtype=jnp.float32)          # target
    sigma = jax.nn.softplus(jax.random.normal(k3, (B, D))) + 0.1  # positive sigma
    sigma = sigma.astype(jnp.float32)
    kl = jnp.abs(jax.random.normal(k4, ())) * 10.0                # synthetic KL scalar
    no_dim = 1.0
    train_size = 1000.0
    kl_weight = 1.0

    elbo = ELBORegressionHetero(train_size)
    out = elbo(x, t, sigma, no_dim, kl, kl_weight)
    out = jax.block_until_ready(out)

    ref = _reference(x, t, sigma, no_dim, kl, train_size, kl_weight)
    np.testing.assert_allclose(np.asarray(out), np.asarray(ref),
                               rtol=5e-5, atol=1e-2)

    print("KERNEL_OK")
</pallas_src>

<mosaic_0001>
module attributes {stable_mosaic.version = 11 : i64} {
  func.func @_nll_partial_kernel(%arg0: i32, %arg1: i32, %arg2: memref<8x128xf32, #tpu.memory_space<vmem>>, %arg3: memref<8x128xf32, #tpu.memory_space<vmem>>, %arg4: memref<8x128xf32, #tpu.memory_space<vmem>>, %arg5: memref<1x8x128xf32, #tpu.memory_space<vmem>>, %arg6: memref<1x8x128xf32, #tpu.memory_space<vmem>>) attributes {dimension_semantics = [#tpu.dimension_semantics<parallel>, #tpu.dimension_semantics<arbitrary>], iteration_bounds = array<i64: 1, 1>, scalar_prefetch = 0 : i64, scratch_operands = 0 : i64, tpu.core_type = #tpu.core_type<tc>, window_params = [{transform_indices = @transform_0, window_bounds = array<i64: 8, 128>}, {transform_indices = @transform_1, window_bounds = array<i64: 8, 128>}, {transform_indices = @transform_2, window_bounds = array<i64: 8, 128>}, {transform_indices = @transform_3, window_bounds = array<i64: 1, 8, 128>}, {transform_indices = @transform_4, window_bounds = array<i64: 1, 8, 128>}]} {
    %c0_i32 = arith.constant 0 : i32
    %0 = arith.cmpi eq, %arg1, %c0_i32 : i32
    %1 = arith.extui %0 : i1 to i32
    %c0_i32_0 = arith.constant 0 : i32
    %2 = arith.cmpi ne, %1, %c0_i32_0 : i32
    scf.if %2 {
      %cst_19 = arith.constant 0.000000e+00 : f32
      %28 = vector.broadcast %cst_19 : f32 to vector<8x128xf32>
      %c0_20 = arith.constant 0 : index
      %c0_21 = arith.constant 0 : index
      %c0_22 = arith.constant 0 : index
      %29 = vector.load %arg5[%c0_20, %c0_21, %c0_22] : memref<1x8x128xf32, #tpu.memory_space<vmem>>, vector<1x8x128xf32>
      %30 = vector.shape_cast %29 : vector<1x8x128xf32> to vector<8x128xf32>
      %31 = vector.shape_cast %28 : vector<8x128xf32> to vector<1x8x128xf32>
      tpu.vector_store %arg5[%c0_20, %c0_21, %c0_22], %31 {strides = array<i32>} : memref<1x8x128xf32, #tpu.memory_space<vmem>>, vector<1x8x128xf32>,
      %cst_23 = arith.constant 0.000000e+00 : f32
      %32 = vector.broadcast %cst_23 : f32 to vector<8x128xf32>
      %c0_24 = arith.constant 0 : index
      %c0_25 = arith.constant 0 : index
      %c0_26 = arith.constant 0 : index
      %33 = vector.load %arg6[%c0_24, %c0_25, %c0_26] : memref<1x8x128xf32, #tpu.memory_space<vmem>>, vector<1x8x128xf32>
      %34 = vector.shape_cast %33 : vector<1x8x128xf32> to vector<8x128xf32>
      %35 = vector.shape_cast %32 : vector<8x128xf32> to vector<1x8x128xf32>
      tpu.vector_store %arg6[%c0_24, %c0_25, %c0_26], %35 {strides = array<i32>} : memref<1x8x128xf32, #tpu.memory_space<vmem>>, vector<1x8x128xf32>,
    } else {
    }
    %c0 = arith.constant 0 : index
    %c0_1 = arith.constant 0 : index
    %3 = vector.load %arg2[%c0, %c0_1] : memref<8x128xf32, #tpu.memory_space<vmem>>, vector<8x128xf32>
    %c0_2 = arith.constant 0 : index
    %c0_3 = arith.constant 0 : index
    %4 = vector.load %arg3[%c0_2, %c0_3] : memref<8x128xf32, #tpu.memory_space<vmem>>, vector<8x128xf32>
    %c0_4 = arith.constant 0 : index
    %c0_5 = arith.constant 0 : index
    %5 = vector.load %arg4[%c0_4, %c0_5] : memref<8x128xf32, #tpu.memory_space<vmem>>, vector<8x128xf32>
    %6 = arith.subf %4, %3 : vector<8x128xf32>
    %7 = arith.mulf %5, %5 : vector<8x128xf32>
    %8 = tpu.reciprocal %7 : vector<8x128xf32> -> vector<8x128xf32>
    %9 = arith.mulf %6, %6 : vector<8x128xf32>
    %10 = arith.mulf %9, %8 : vector<8x128xf32>
    %11 = math.log %5 : vector<8x128xf32>
    %c0_6 = arith.constant 0 : index
    %c0_7 = arith.constant 0 : index
    %c0_8 = arith.constant 0 : index
    %12 = vector.load %arg6[%c0_6, %c0_7, %c0_8] : memref<1x8x128xf32, #tpu.memory_space<vmem>>, vector<1x8x128xf32>
    %13 = vector.shape_cast %12 : vector<1x8x128xf32> to vector<8x128xf32>
    %14 = vector.shape_cast %10 : vector<8x128xf32> to vector<1x8x128xf32>
    %cst = arith.constant dense<0.000000e+00> : vector<8x128xf32>
    %15 = vector.multi_reduction <add>, %14, %cst [0] : vector<1x8x128xf32> to vector<8x128xf32>
    %16 = arith.addf %13, %15 : vector<8x128xf32>
    %c0_9 = arith.constant 0 : index
    %c0_10 = arith.constant 0 : index
    %c0_11 = arith.constant 0 : index
    %17 = vector.load %arg6[%c0_9, %c0_10, %c0_11] : memref<1x8x128xf32, #tpu.memory_space<vmem>>, vector<1x8x128xf32>
    %18 = vector.shape_cast %17 : vector<1x8x128xf32> to vector<8x128xf32>
    %19 = vector.shape_cast %16 : vector<8x128xf32> to vector<1x8x128xf32>
    tpu.vector_store %arg6[%c0_9, %c0_10, %c0_11], %19 {strides = array<i32>} : memref<1x8x128xf32, #tpu.memory_space<vmem>>, vector<1x8x128xf32>,
    %c0_12 = arith.constant 0 : index
    %c0_13 = arith.constant 0 : index
    %c0_14 = arith.constant 0 : index
    %20 = vector.load %arg5[%c0_12, %c0_13, %c0_14] : memref<1x8x128xf32, #tpu.memory_space<vmem>>, vector<1x8x128xf32>
    %21 = vector.shape_cast %20 : vector<1x8x128xf32> to vector<8x128xf32>
    %22 = vector.shape_cast %11 : vector<8x128xf32> to vector<1x8x128xf32>
    %cst_15 = arith.constant dense<0.000000e+00> : vector<8x128xf32>
    %23 = vector.multi_reduction <add>, %22, %cst_15 [0] : vector<1x8x128xf32> to vector<8x128xf32>
    %24 = arith.addf %21, %23 : vector<8x128xf32>
    %c0_16 = arith.constant 0 : index
    %c0_17 = arith.constant 0 : index
    %c0_18 = arith.constant 0 : index
    %25 = vector.load %arg5[%c0_16, %c0_17, %c0_18] : memref<1x8x128xf32, #tpu.memory_space<vmem>>, vector<1x8x128xf32>
    %26 = vector.shape_cast %25 : vector<1x8x128xf32> to vector<8x128xf32>
    %27 = vector.shape_cast %24 : vector<8x128xf32> to vector<1x8x128xf32>
    tpu.vector_store %arg5[%c0_16, %c0_17, %c0_18], %27 {strides = array<i32>} : memref<1x8x128xf32, #tpu.memory_space<vmem>>, vector<1x8x128xf32>,
    return
  }
  func.func @transform_0(%arg0: i32, %arg1: i32) -> (i32, i32) {
    %c1_i32 = arith.constant 1 : i32
    %0 = arith.muli %arg0, %c1_i32 : i32
    %1 = arith.addi %0, %arg1 : i32
    %c0_i32 = arith.constant 0 : i32
    %c0_i32_0 = arith.constant 0 : i32
    return %1, %c0_i32 : i32, i32
  }
  func.func @transform_1(%arg0: i32, %arg1: i32) -> (i32, i32) {
    %c1_i32 = arith.constant 1 : i32
    %0 = arith.muli %arg0, %c1_i32 : i32
    %1 = arith.addi %0, %arg1 : i32
    %c0_i32 = arith.constant 0 : i32
    %c0_i32_0 = arith.constant 0 : i32
    return %1, %c0_i32 : i32, i32
  }
  func.func @transform_2(%arg0: i32, %arg1: i32) -> (i32, i32) {
    %c1_i32 = arith.constant 1 : i32
    %0 = arith.muli %arg0, %c1_i32 : i32
    %1 = arith.addi %0, %arg1 : i32
    %c0_i32 = arith.constant 0 : i32
    %c0_i32_0 = arith.constant 0 : i32
    return %1, %c0_i32 : i32, i32
  }
  func.func @transform_3(%arg0: i32, %arg1: i32) -> (i32, i32, i32) {
    %c0_i32 = arith.constant 0 : i32
    %c0_i32_0 = arith.constant 0 : i32
    %c0_i32_1 = arith.constant 0 : i32
    return %arg0, %c0_i32, %c0_i32_0 : i32, i32, i32
  }
  func.func @transform_4(%arg0: i32, %arg1: i32) -> (i32, i32, i32) {
    %c0_i32 = arith.constant 0 : i32
    %c0_i32_0 = arith.constant 0 : i32
    %c0_i32_1 = arith.constant 0 : i32
    return %arg0, %c0_i32, %c0_i32_0 : i32, i32, i32
  }
}

</mosaic_0001>

<bundles_post_ra>
// kernel: tpu_custom_call.1
= control target key start
LH: loop header
LB: loop body
LE: loop exit
PB: predicated region body
PF: predicated region fallthrough
CT: control target
= control target key end

     0   :  { %10 = vsyncpa [#allocation3], 0  ;;  %s325_s0 = inlined_call_operand.hbm [shape: f32[8,128], index: 0, kind: input, shape index: {}]   ;;  %s326_s1 = inlined_call_operand.hbm [shape: f32[8,128], index: 1, kind: input, shape index: {}]   ;;  %s327_s2 = inlined_call_operand.hbm [shape: f32[8,128], index: 2, kind: input, shape index: {}]   ;;  %s328_s3 = inlined_call_operand.hbm [shape: f32[1,8,128], index: 3, kind: output, shape index: {0}]   ;;  %s329_s4 = inlined_call_operand.hbm [shape: f32[1,8,128], index: 4, kind: output, shape index: {1}]  }
   0x1   :  { %11 = vsyncpa [#allocation6], 0 }
   0x2   :  { %12 = vsyncpa [#allocation4], 0  ;;  %s36_s17 = sshll.u32 %s326_s1, 4  ;;  %s37_s17 = int_to_ptr.hbm [resolvable:$true] %s36_s17 }
   0x3   :  { %13 = vsyncpa [#allocation10], 0  ;;  %s280_s18 = smov [#allocation5]   ;;  %s22_s22 = sshll.u32 %s325_s0, 4  ;;  %s23_s22 = int_to_ptr.hbm [resolvable:$true] %s22_s22 }
   0x4   :  { %s38_s19 = sshll.u32 %s280_s18, 4  ;;  %s281_s23 = smov [#allocation2]   ;;  %s39_s19 = int_to_ptr.vmem [resolvable:$true] %s38_s19 }
   0x5   :  { %41 = dma.hbm_to_vmem [thread:$0]  %s37_s17, 128, %s39_s19, [#allocation6]  }
   0x6   :  { %s24_s24 = sshll.u32 %s281_s23, 4  ;;  %s50_s27 = sshll.u32 %s327_s2, 4  ;;  %s25_s24 = int_to_ptr.vmem [resolvable:$true] %s24_s24  ;;  %s51_s27 = int_to_ptr.hbm [resolvable:$true] %s50_s27 }
   0x7   :  { %27 = dma.hbm_to_vmem [thread:$0]  %s23_s22, 128, %s25_s24, [#allocation3]  }
   0x8   :  { %s282_s1 = smov [#allocation7]  }
   0x9   :  { %s52_s28 = sshll.u32 %s282_s1, 4  ;;  %s53_s28 = int_to_ptr.vmem [resolvable:$true] %s52_s28 }
   0xa   :  { %55 = dma.hbm_to_vmem [thread:$0]  %s51_s27, 128, %s53_s28, [#allocation6]  }
   0xb   :  { %272 = dma.done.wait [#allocation3], 128  }
   0xc   :  { %273 = vsyncadd [#allocation3], 4294967168 }
   0xd   :  { %274 = dma.done.wait [#allocation6], 256  }
   0xe   :  { %275 = vsyncadd [#allocation6], 4294967040  ;;  %v79_v0 = vld [vmem:[#allocation7] sm:$0xff]  ;;  %s283_s0 = smov [#allocation8]   ;;  %s115_s5 = sshll.u32 %s328_s3, 4  ;;  %v77_v3 = vld [vmem:[#allocation2] sm:$0xff]  ;;  %s116_s5 = int_to_ptr.hbm [resolvable:$true] %s115_s5 }
   0xf   :  { %v81_v1 = vmul.f32 %v79_v0, %v79_v0  ;;  %148 = vlog2.f32 %v79_v0  ;;  %s113_s29 = sshll.u32 %s283_s0, 4  ;;  %v78_v4 = vld [vmem:[#allocation5] sm:$0xff]  ;;  %s284_s3 = smov [#allocation9]   ;;  %s114_s29 = int_to_ptr.vmem [resolvable:$true] %s113_s29 }
  0x10   :  { %v80_v8 = vsub.f32 %v78_v4, %v77_v3  ;;  %s124_s6 = sshll.u32 %s284_s3, 4  ;;  %s126_s9 = sshll.u32 %s329_s4, 4  ;;  %s125_s6 = int_to_ptr.vmem [resolvable:$true] %s124_s6  ;;  %s127_s9 = int_to_ptr.hbm [resolvable:$true] %s126_s9 }
  0x11   :  { %150 = vrcp.f32 %v81_v1  ;;  %v93_v9 = vand.u32 2147483648, %v81_v1  ;;  %vm87_vm0 = vweird.f32 %v81_v1  ;;  %v91_v11 = vand.u32 2147483647, %v81_v1 }
  0x12   :  { %v96_v15 = vmul.f32 %v80_v8, %v80_v8 }
  0x13   :  { %v94_v13 = vor.u32 1.1754944e-38, %v93_v9  ;;  %vm92_vm3 = vcmp.eq.f32.partialorder %v91_v11, 8.507059e+37 }
  0x15   :  { %v149_v2 = vpop.eup %148 }
  0x16   :  { %v99_v5 = vmul.f32 0.6931472, %v149_v2 }
  0x17   :  { %v151_v6 = vpop.eup %150 }
  0x18   :  { %v83_v7 = vmul.f32 %v151_v6, %v81_v1  ;;  %vm88_vm1 = vweird.f32 %v151_v6  ;;  %107 = vst [vmem:[#allocation8] sm:$0xff] %v99_v5 }
  0x19   :  { %118 = dma.vmem_to_hbm [thread:$0]  %s114_s29, 128, %s116_s5, [#allocation4]   ;;  %vm89_vm2 = vmor %vm87_vm0, %vm88_vm1 }
  0x1a   :  { %v84_v10 = vsub.f32 1.0, %v83_v7 }
  0x1c   :  { %v85_v12 = vmul.f32 %v151_v6, %v84_v10 }
  0x1e   :  { %v86_v14 = vadd.f32 %v151_v6, %v85_v12 }
  0x20   :  { %v90_v16 = vsel %vm89_vm2, %v151_v6, %v86_v14 }
  0x21   :  { %v95_v17 = vsel %vm92_vm3, %v94_v13, %v90_v16 }
  0x22   :  { %v97_v18 = vmul.f32 %v96_v15, %v95_v17 }
  0x24   :  { %103 = vst [vmem:[#allocation9] sm:$0xff] %v97_v18 }
  0x25   :  { %129 = dma.vmem_to_hbm [thread:$0]  %s125_s6, 128, %s127_s9, [#allocation10]  }
  0x26   :  { %276 = dma.done.wait [#allocation4], 128  }
  0x27   :  { %277 = vsyncadd [#allocation4], 4294967168 }
  0x28   :  { %278 = dma.done.wait [#allocation10], 128  }
  0x29   :  { %279 = vsyncadd [#allocation10], 4294967168 }
  0x2a   :  { %138 = vsyncpa [#allocation3], 1 }
  0x2b   :  { %139 = vsyncpa [#allocation6], 1 }
  0x2c   :  { %140 = vsyncpa [#allocation4], 1 }
  0x2d   :  { %141 = vsyncpa [#allocation10], 1 }

</bundles_post_ra>
